<compile_context>
chip_gen: v7x
topology: tpu7x:2x2x1
jax: 0.10.0
libtpu: 0.0.40
codegen_flags: <defaults>
</compile_context>

<pallas_src>
import numpy as np
import jax
import jax.numpy as jnp
from jax.experimental import pallas as pl
from jax.experimental.pallas import tpu as pltpu


_DMA_WINDOW = 8  # max concurrently in-flight frame copies per core


def _slow_frame_indices(T: int, alpha: int):
    """Replicates torch.linspace(0, T-1, T//alpha).long() bit-exactly.

    torch's CPU linspace kernel evaluates `start + i * step` with a float64
    step, stores float32, and .long() truncates toward zero.
    """
    t_slow = T // alpha
    if t_slow <= 0:
        return []
    if t_slow == 1:
        return [0]
    step = float(T - 1) / float(t_slow - 1)          # float64 step
    return [int(np.float32(i * step)) for i in range(t_slow)]


def _num_tensorcores() -> int:
    """Best-effort TensorCore count per chip (2 on v7x, else 1)."""
    try:
        info = pltpu.get_tpu_info()
        for attr in ("num_cores", "tensorcores_per_chip", "core_count"):
            n = getattr(info, attr, None)
            if isinstance(n, int) and n > 0:
                return n
    except Exception:
        pass
    try:
        if "v7" in jax.devices()[0].device_kind.lower():
            return 2
    except Exception:
        pass
    return 1


def _make_gather_kernel(src_idx, num_cores):
    """Builds a kernel that copies frames[:, src_idx, :] -> out, all-static."""
    # (dst, src) pairs striped round-robin across TensorCores.
    stripes = [
        [(dst, src) for dst, src in enumerate(src_idx) if dst % num_cores == c]
        for c in range(num_cores)
    ]

    def kernel(x_hbm, o_hbm, sem):
        # x_hbm: (C, T, HW)       raw HBM ref (no auto-DMA)
        # o_hbm: (C, t_slow, HW)  raw HBM ref (no auto-DMA)
        # sem:   (_DMA_WINDOW,)   DMA semaphore ring
        def issue(pairs):
            inflight = [None] * _DMA_WINDOW
            for n, (dst, src) in enumerate(pairs):
                slot = n % _DMA_WINDOW
                if inflight[slot] is not None:      # bound in-flight DMAs
                    inflight[slot].wait()
                cp = pltpu.make_async_copy(
                    x_hbm.at[:, pl.ds(src, 1), :],  # static source offset
                    o_hbm.at[:, pl.ds(dst, 1), :],  # static destination slot
                    sem.at[slot],
                )
                cp.start()
                inflight[slot] = cp
            for cp in inflight:                     # drain the window
                if cp is not None:
                    cp.wait()

        if num_cores == 1:
            issue(stripes[0])
        else:
            for c, pairs in enumerate(stripes):
                if not pairs:
                    continue

                @pl.when(pl.program_id(0) == c)
                def _(pairs=pairs):
                    issue(pairs)

    return kernel


def pack_pathway(frames: jnp.ndarray, alpha: int):
    """frames: (C, T, H, W). Returns [slow_pathway, fast_pathway]."""
    C, T, H, W = frames.shape
    fast = frames  # identity pathway (zero cost)

    src_idx = _slow_frame_indices(T, alpha)
    t_slow = len(src_idx)
    if t_slow == 0:
        # T < alpha: empty slow pathway (guarded host-side, not in kernel).
        return [jnp.zeros((C, 0, H, W), frames.dtype), fast]

    num_cores = min(_num_tensorcores(), t_slow)

    # Fold spatial dims (free, layout-preserving reshape) so each per-channel
    # frame chunk is one contiguous H*W run for the DMA engine.
    x = frames.reshape(C, T, H * W)
    dsize = jnp.dtype(frames.dtype).itemsize

    slow = pl.pallas_call(
        _make_gather_kernel(src_idx, num_cores),
        out_shape=jax.ShapeDtypeStruct((C, t_slow, H * W), frames.dtype),
        grid_spec=pltpu.PrefetchScalarGridSpec(
            num_scalar_prefetch=0,
            grid=(num_cores,),
            in_specs=[pl.BlockSpec(memory_space=pl.ANY)],   # stay in HBM
            out_specs=pl.BlockSpec(memory_space=pl.ANY),    # stay in HBM
            scratch_shapes=[pltpu.SemaphoreType.DMA((_DMA_WINDOW,))],
        ),
        compiler_params=pltpu.CompilerParams(
            dimension_semantics=("parallel",) if num_cores > 1 else ("arbitrary",),
        ),
        cost_estimate=pl.CostEstimate(
            flops=0,
            transcendentals=0,
            bytes_accessed=2 * C * t_slow * H * W * dsize,
        ),
    )(x)

    return [slow.reshape(C, t_slow, H, W), fast]


if __name__ == "__main__":
    # Small, deterministic example: C=3 channels, T=8 frames, 16x16 spatial,
    # alpha=4 -> t_slow=2 slow frames.
    key = jax.random.PRNGKey(0)
    C, T, H, W = 3, 8, 16, 16
    alpha = 4
    frames = jax.random.normal(key, (C, T, H, W), dtype=jnp.float32)

    slow, fast = pack_pathway(frames, alpha)
    jax.block_until_ready(slow)
    jax.block_until_ready(fast)

    # Reference check (pure JAX) using the exact PyTorch index recurrence.
    ref_idx = jnp.array(_slow_frame_indices(T, alpha), dtype=jnp.int32)
    ref_slow = jnp.take(frames, ref_idx, axis=1)
    assert slow.shape == (C, T // alpha, H, W)
    assert fast.shape == (C, T, H, W)
    assert jnp.array_equal(slow, ref_slow)
    assert jnp.array_equal(fast, frames)

    print("KERNEL_OK")
</pallas_src>

<mosaic_0001>
module attributes {stable_mosaic.version = 11 : i64} {
  func.func @kernel(%arg0: i32, %arg1: memref<3x8x256xf32, #tpu.memory_space<any>>, %arg2: memref<3x2x256xf32, #tpu.memory_space<any>>, %arg3: memref<8x!tpu.dma_semaphore, #tpu.memory_space<semaphore_mem>>) attributes {dimension_semantics = [#tpu.dimension_semantics<arbitrary>], iteration_bounds = array<i64: 1>, scalar_prefetch = 0 : i64, scratch_operands = 1 : i64, tpu.core_type = #tpu.core_type<tc>, window_params = [{}, {}]} {
    %c0_i32 = arith.constant 0 : i32
    %c0_i32_0 = arith.constant 0 : i32
    %c0_i32_1 = arith.constant 0 : i32
    %c0_i32_2 = arith.constant 0 : i32
    %0 = tpu.memref_slice %arg1[%c0_i32_0, %c0_i32_1, %c0_i32_2] : memref<3x8x256xf32, #tpu.memory_space<any>> -> memref<3x1x256xf32, #tpu.memory_space<any>>
    %c0_i32_3 = arith.constant 0 : i32
    %c0_i32_4 = arith.constant 0 : i32
    %c0_i32_5 = arith.constant 0 : i32
    %1 = tpu.memref_slice %arg2[%c0_i32_3, %c0_i32_4, %c0_i32_5] : memref<3x2x256xf32, #tpu.memory_space<any>> -> memref<3x1x256xf32, #tpu.memory_space<any>>
    %2 = tpu.memref_slice %arg3[%c0_i32] : memref<8x!tpu.dma_semaphore, #tpu.memory_space<semaphore_mem>> -> memref<1x!tpu.dma_semaphore, #tpu.memory_space<semaphore_mem>>
    %3 = tpu.memref_squeeze %2 : memref<1x!tpu.dma_semaphore, #tpu.memory_space<semaphore_mem>> -> memref<!tpu.dma_semaphore, #tpu.memory_space<semaphore_mem>>
    tpu.enqueue_dma source(%0 : memref<3x1x256xf32, #tpu.memory_space<any>>) target(%1 : memref<3x1x256xf32, #tpu.memory_space<any>>) target_semaphore(%3 : memref<!tpu.dma_semaphore, #tpu.memory_space<semaphore_mem>>)
    %c1_i32 = arith.constant 1 : i32
    %c0_i32_6 = arith.constant 0 : i32
    %c7_i32 = arith.constant 7 : i32
    %c0_i32_7 = arith.constant 0 : i32
    %4 = tpu.memref_slice %arg1[%c0_i32_6, %c7_i32, %c0_i32_7] : memref<3x8x256xf32, #tpu.memory_space<any>> -> memref<3x1x256xf32, #tpu.memory_space<any>>
    %c0_i32_8 = arith.constant 0 : i32
    %c1_i32_9 = arith.constant 1 : i32
    %c0_i32_10 = arith.constant 0 : i32
    %5 = tpu.memref_slice %arg2[%c0_i32_8, %c1_i32_9, %c0_i32_10] : memref<3x2x256xf32, #tpu.memory_space<any>> -> memref<3x1x256xf32, #tpu.memory_space<any>>
    %6 = tpu.memref_slice %arg3[%c1_i32] : memref<8x!tpu.dma_semaphore, #tpu.memory_space<semaphore_mem>> -> memref<1x!tpu.dma_semaphore, #tpu.memory_space<semaphore_mem>>
    %7 = tpu.memref_squeeze %6 : memref<1x!tpu.dma_semaphore, #tpu.memory_space<semaphore_mem>> -> memref<!tpu.dma_semaphore, #tpu.memory_space<semaphore_mem>>
    tpu.enqueue_dma source(%4 : memref<3x1x256xf32, #tpu.memory_space<any>>) target(%5 : memref<3x1x256xf32, #tpu.memory_space<any>>) target_semaphore(%7 : memref<!tpu.dma_semaphore, #tpu.memory_space<semaphore_mem>>)
    %c0_i32_11 = arith.constant 0 : i32
    %c0_i32_12 = arith.constant 0 : i32
    %c0_i32_13 = arith.constant 0 : i32
    %c0_i32_14 = arith.constant 0 : i32
    %8 = tpu.memref_slice %arg1[%c0_i32_12, %c0_i32_13, %c0_i32_14] : memref<3x8x256xf32, #tpu.memory_space<any>> -> memref<3x1x256xf32, #tpu.memory_space<any>>
    %c0_i32_15 = arith.constant 0 : i32
    %c0_i32_16 = arith.constant 0 : i32
    %c0_i32_17 = arith.constant 0 : i32
    %9 = tpu.memref_slice %arg2[%c0_i32_15, %c0_i32_16, %c0_i32_17] : memref<3x2x256xf32, #tpu.memory_space<any>> -> memref<3x1x256xf32, #tpu.memory_space<any>>
    %10 = tpu.memref_slice %arg3[%c0_i32_11] : memref<8x!tpu.dma_semaphore, #tpu.memory_space<semaphore_mem>> -> memref<1x!tpu.dma_semaphore, #tpu.memory_space<semaphore_mem>>
    %11 = tpu.memref_squeeze %10 : memref<1x!tpu.dma_semaphore, #tpu.memory_space<semaphore_mem>> -> memref<!tpu.dma_semaphore, #tpu.memory_space<semaphore_mem>>
    tpu.wait_dma2 semaphore(%11 : memref<!tpu.dma_semaphore, #tpu.memory_space<semaphore_mem>>) src(%8 : memref<3x1x256xf32, #tpu.memory_space<any>>) dst(%9 : memref<3x1x256xf32, #tpu.memory_space<any>>)
    %c1_i32_18 = arith.constant 1 : i32
    %c0_i32_19 = arith.constant 0 : i32
    %c7_i32_20 = arith.constant 7 : i32
    %c0_i32_21 = arith.constant 0 : i32
    %12 = tpu.memref_slice %arg1[%c0_i32_19, %c7_i32_20, %c0_i32_21] : memref<3x8x256xf32, #tpu.memory_space<any>> -> memref<3x1x256xf32, #tpu.memory_space<any>>
    %c0_i32_22 = arith.constant 0 : i32
    %c1_i32_23 = arith.constant 1 : i32
    %c0_i32_24 = arith.constant 0 : i32
    %13 = tpu.memref_slice %arg2[%c0_i32_22, %c1_i32_23, %c0_i32_24] : memref<3x2x256xf32, #tpu.memory_space<any>> -> memref<3x1x256xf32, #tpu.memory_space<any>>
    %14 = tpu.memref_slice %arg3[%c1_i32_18] : memref<8x!tpu.dma_semaphore, #tpu.memory_space<semaphore_mem>> -> memref<1x!tpu.dma_semaphore, #tpu.memory_space<semaphore_mem>>
    %15 = tpu.memref_squeeze %14 : memref<1x!tpu.dma_semaphore, #tpu.memory_space<semaphore_mem>> -> memref<!tpu.dma_semaphore, #tpu.memory_space<semaphore_mem>>
    tpu.wait_dma2 semaphore(%15 : memref<!tpu.dma_semaphore, #tpu.memory_space<semaphore_mem>>) src(%12 : memref<3x1x256xf32, #tpu.memory_space<any>>) dst(%13 : memref<3x1x256xf32, #tpu.memory_space<any>>)
    return
  }
}

</mosaic_0001>

<bundles_post_ra>
// kernel: tpu_custom_call.1
= control target key start
LH: loop header
LB: loop body
LE: loop exit
PB: predicated region body
PF: predicated region fallthrough
CT: control target
= control target key end

     0   :  { %s128_s6 = smov 128   ;;  %s129_s7 = smov 32   ;;  %s158_s0 = inlined_call_operand.hbm [shape: f32[3,8,256], index: 0, kind: input, shape index: {}]   ;;  %s159_s1 = inlined_call_operand.hbm [shape: f32[3,2,256], index: 1, kind: output, shape index: {}]  }
   0x1   :  { %18 = sst [smem:[#allocation4]] %s128_s6  ;;  %s130_s8 = smov 1  }
   0x2   :  { %20 = sst [smem:[#allocation4 + $0x1]] %s129_s7  ;;  %s25_s11 = scalar_lea.hbm %s158_s0, 112 }
   0x3   :  { %22 = sst [smem:[#allocation4 + $0x2]] %s130_s8  ;;  %s131_s12 = smov [#allocation2]  }
   0x4   :  { %s132_s13 = smov [#allocation3]   ;;  %s133_s14 = smov 0  }
   0x5   :  { %24 = dma.general %s158_s0, 96, %s159_s1, %s131_s12, %s132_s13, [#allocation4], %s133_s14, 0  }
   0x6   :  { %40 = sst [smem:[#allocation6]] %s128_s6  ;;  %s26_s21 = scalar_lea.hbm %s159_s1, 16 }
   0x7   :  { %42 = sst [smem:[#allocation6 + $0x1]] %s129_s7  ;;  %s134_s22 = smov [#allocation2 + $0x1]  }
   0x8   :  { %44 = sst [smem:[#allocation6 + $0x2]] %s130_s8  ;;  %s135_s23 = smov [#allocation5]  }
   0x9   :  { %46 = dma.general %s25_s11, 96, %s26_s21, %s134_s22, %s135_s23, [#allocation6], %s133_s14, 0  }
   0xa   :  { %124 = dma.done.wait [#allocation2], 96 }
   0xb   :  { %125 = vsyncadd [#allocation2], 4294967200 }
   0xc   :  { %126 = dma.done.wait [#allocation2 + $0x1], 96 }
   0xd   :  { %127 = vsyncadd [#allocation2 + $0x1], 4294967200 }
   0xe   :  { %53 = vsyncmov [#allocation2] }
  0x11   :  { %s54_s24 = vpop.sfrf %53 }
  0x12   :  { %p108_p0 = scmp.ne.s32.totalorder %s54_s24, 0 }
  0x14   :  { %58 = shalt.err (%p108_p0)  }
  0x15   :  { %60 = vsyncmov [#allocation2 + $0x1] }
  0x18   :  { %s61_s0 = vpop.sfrf %60 }
  0x19   :  { %p109_p1 = scmp.ne.s32.totalorder %s61_s0, 0 }
  0x1b   :  { %65 = shalt.err (%p109_p1)  }
  0x1c   :  { %67 = vsyncmov [#allocation2 + $0x2] }
  0x1f   :  { %s68_s25 = vpop.sfrf %67 }
  0x20   :  { %p110_p2 = scmp.ne.s32.totalorder %s68_s25, 0 }
  0x22   :  { %72 = shalt.err (%p110_p2)  }
  0x23   :  { %74 = vsyncmov [#allocation2 + $0x3] }
  0x26   :  { %s75_s1 = vpop.sfrf %74 }
  0x27   :  { %p111_p3 = scmp.ne.s32.totalorder %s75_s1, 0 }
  0x29   :  { %79 = shalt.err (%p111_p3)  }
  0x2a   :  { %81 = vsyncmov [#allocation2 + $0x4] }
  0x2d   :  { %s82_s26 = vpop.sfrf %81 }
  0x2e   :  { %p112_p4 = scmp.ne.s32.totalorder %s82_s26, 0 }
  0x30   :  { %86 = shalt.err (%p112_p4)  }
  0x31   :  { %88 = vsyncmov [#allocation2 + $0x5] }
  0x34   :  { %s89_s27 = vpop.sfrf %88 }
  0x35   :  { %p113_p5 = scmp.ne.s32.totalorder %s89_s27, 0 }
  0x37   :  { %93 = shalt.err (%p113_p5)  }
  0x38   :  { %95 = vsyncmov [#allocation2 + $0x6] }
  0x3b   :  { %s96_s28 = vpop.sfrf %95 }
  0x3c   :  { %p114_p6 = scmp.ne.s32.totalorder %s96_s28, 0 }
  0x3e   :  { %100 = shalt.err (%p114_p6)  }
  0x3f   :  { %102 = vsyncmov [#allocation2 + $0x7] }
  0x42   :  { %s103_s29 = vpop.sfrf %102 }
  0x43   :  { %p115_p7 = scmp.ne.s32.totalorder %s103_s29, 0 }
  0x45   :  { %107 = shalt.err (%p115_p7)  }

</bundles_post_ra>
